<compile_context>
chip_gen: v7x
topology: tpu7x:2x2x1
jax: 0.10.0
libtpu: 0.0.40
codegen_flags: <defaults>
</compile_context>

<pallas_src>
import functools

import jax
import jax.numpy as jnp
from jax.experimental import pallas as pl
from jax.experimental.pallas import tpu as pltpu


def _round_up(x, m):
    return ((x + m - 1) // m) * m


def _rev_block_kernel(q1_ref, q2_ref, qd1_ref, qd2_ref,
                      w1f_ref, b1f_ref, w2f_ref, b2f_ref,
                      w1g_ref, b1g_ref, w2g_ref, b2g_ref,
                      q1_out, q2_out, qd1_out, qd2_out, *, dt):
    f32 = jnp.float32
    q1 = q1_ref[...].astype(f32)
    q2 = q2_ref[...].astype(f32)
    qd1 = qd1_ref[...].astype(f32)
    qd2 = qd2_ref[...].astype(f32)

    # accel_f = F(q2)  (Linear D->H, tanh, Linear H->D)
    hf = jnp.tanh(
        jnp.dot(q2, w1f_ref[...].astype(f32), preferred_element_type=f32)
        + b1f_ref[...].astype(f32))
    accel_f = (jnp.dot(hf, w2f_ref[...].astype(f32), preferred_element_type=f32)
               + b2f_ref[...].astype(f32))

    qd1_new = qd1 + accel_f * dt
    q1_new = q1 + qd1_new * dt          # includes the dt^2 * accel_f term

    # accel_g = G(q1_new)
    hg = jnp.tanh(
        jnp.dot(q1_new, w1g_ref[...].astype(f32), preferred_element_type=f32)
        + b1g_ref[...].astype(f32))
    accel_g = (jnp.dot(hg, w2g_ref[...].astype(f32), preferred_element_type=f32)
               + b2g_ref[...].astype(f32))

    qd2_new = qd2 + accel_g * dt
    q2_new = q2 + qd2_new * dt

    q1_out[...] = q1_new.astype(q1_out.dtype)
    q2_out[...] = q2_new.astype(q2_out.dtype)
    qd1_out[...] = qd1_new.astype(qd1_out.dtype)
    qd2_out[...] = qd2_new.astype(qd2_out.dtype)


def _tpu_budget():
    """Generation-aware budgets: (state_vmem_budget_bytes, has_two_tcs, vmem_limit_bytes)."""
    vmem_cap = None
    try:
        info = pltpu.get_tpu_info()
        vmem_cap = getattr(info, "vmem_capacity_bytes", None)
    except Exception:
        vmem_cap = None
    if vmem_cap is None:
        vmem_cap = 64 << 20  # conservative default: assume small-VMEM part
    if vmem_cap <= (64 << 20):
        # v7x-class: 64 MiB VMEM per TensorCore, 2 TensorCores per chip.
        return 12 << 20, True, 32 << 20
    # v5e / v6e: 128 MiB VMEM, single TensorCore.
    return 24 << 20, False, 64 << 20


def reversible_lnn_block(q1, q2, q_dot1, q_dot2, params, *, dt=0.1, tm=None):
    """Forward pass of ReversibleLNNBlock.  State tensors are [N, D], N = batch*seq."""
    N, D = q1.shape
    H = params["w1f"].shape[1]
    itemsize = jnp.dtype(q1.dtype).itemsize

    state_budget, two_tc, vmem_limit = _tpu_budget()

    # Row alignment = sublane height for this dtype (8 for f32, 16 for bf16, ...).
    align = max(8, 32 // itemsize)

    # Accurate VMEM cost per row: 4 input + 4 output blocks, double-buffered,
    # minor dim lane-padded to 128.
    lane_d = _round_up(D, 128)
    vmem_per_row = 2 * 8 * lane_d * itemsize
    max_rows = max(align, (state_budget // vmem_per_row) // align * align)

    tm_req = 4096 if tm is None else int(tm)
    tm_eff = max(align, min(_round_up(min(tm_req, N), align), max_rows))

    # On 2-TC parts only: split a single-tile problem so both TensorCores get work.
    if two_tc and pl.cdiv(N, tm_eff) == 1 and N > 2 * align:
        tm_eff = _round_up(pl.cdiv(N, 2), align)

    grid = pl.cdiv(N, tm_eff)  # ragged tail: Pallas clips the last block's writeback

    state_spec = pl.BlockSpec((tm_eff, D), lambda i: (i, 0))
    # Constant index_maps -> the (tiny) weight/bias DMAs are only issued once.
    w1_spec = pl.BlockSpec((D, H), lambda i: (0, 0))
    b1_spec = pl.BlockSpec((1, H), lambda i: (0, 0))
    w2_spec = pl.BlockSpec((H, D), lambda i: (0, 0))
    b2_spec = pl.BlockSpec((1, D), lambda i: (0, 0))

    kernel = functools.partial(_rev_block_kernel, dt=float(dt))

    out_shape = tuple(
        jax.ShapeDtypeStruct((N, D), a.dtype) for a in (q1, q2, q_dot1, q_dot2))

    return pl.pallas_call(
        kernel,
        out_shape=out_shape,
        grid_spec=pltpu.PrefetchScalarGridSpec(
            num_scalar_prefetch=0,
            grid=(grid,),
            in_specs=[
                state_spec, state_spec, state_spec, state_spec,
                w1_spec, b1_spec, w2_spec, b2_spec,
                w1_spec, b1_spec, w2_spec, b2_spec,
            ],
            out_specs=[state_spec, state_spec, state_spec, state_spec],
        ),
        compiler_params=pltpu.CompilerParams(
            dimension_semantics=("parallel",),
            vmem_limit_bytes=vmem_limit,
        ),
    )(
        q1, q2, q_dot1, q_dot2,
        params["w1f"], params["b1f"], params["w2f"], params["b2f"],
        params["w1g"], params["b1g"], params["w2g"], params["b2g"],
    )


def _reference(q1, q2, qd1, qd2, params, dt=0.1):
    def mlp(x, w1, b1, w2, b2):
        return jnp.tanh(x @ w1 + b1) @ w2 + b2

    accel_f = mlp(q2, params["w1f"], params["b1f"][0], params["w2f"], params["b2f"][0])
    qd1_new = qd1 + accel_f * dt
    q1_new = q1 + qd1_new * dt
    accel_g = mlp(q1_new, params["w1g"], params["b1g"][0], params["w2g"], params["b2g"][0])
    qd2_new = qd2 + accel_g * dt
    q2_new = q2 + qd2_new * dt
    return q1_new, q2_new, qd1_new, qd2_new


if __name__ == "__main__":
    # embed_dim = 64 -> each half is D = 32 features; hidden_dim = 64.
    batch, seq = 2, 8
    N = batch * seq           # 16 rows
    D = 32                    # embed_dim // 2
    H = 64                    # hidden_dim
    dt = 0.1

    key = jax.random.PRNGKey(0)
    ks = jax.random.split(key, 12)

    params = {
        "w1f": 0.1 * jax.random.normal(ks[0], (D, H), jnp.float32),
        "b1f": 0.1 * jax.random.normal(ks[1], (1, H), jnp.float32),
        "w2f": 0.1 * jax.random.normal(ks[2], (H, D), jnp.float32),
        "b2f": 0.1 * jax.random.normal(ks[3], (1, D), jnp.float32),
        "w1g": 0.1 * jax.random.normal(ks[4], (D, H), jnp.float32),
        "b1g": 0.1 * jax.random.normal(ks[5], (1, H), jnp.float32),
        "w2g": 0.1 * jax.random.normal(ks[6], (H, D), jnp.float32),
        "b2g": 0.1 * jax.random.normal(ks[7], (1, D), jnp.float32),
    }

    q1 = jax.random.normal(ks[8], (N, D), jnp.float32)
    q2 = jax.random.normal(ks[9], (N, D), jnp.float32)
    q_dot1 = jax.random.normal(ks[10], (N, D), jnp.float32)
    q_dot2 = jax.random.normal(ks[11], (N, D), jnp.float32)

    outs = jax.jit(
        functools.partial(reversible_lnn_block, dt=dt)
    )(q1, q2, q_dot1, q_dot2, params)
    outs = jax.block_until_ready(outs)

    refs = _reference(q1, q2, q_dot1, q_dot2, params, dt=dt)
    for o, r in zip(outs, refs):
        assert o.shape == r.shape and o.dtype == r.dtype
        assert jnp.allclose(o, r, atol=1e-4, rtol=1e-4)

    print("KERNEL_OK")
</pallas_src>

<mosaic_0001>
module attributes {stable_mosaic.version = 11 : i64} {
  func.func @_rev_block_kernel(%arg0: i32, %arg1: memref<16x32xf32, #tpu.memory_space<vmem>>, %arg2: memref<16x32xf32, #tpu.memory_space<vmem>>, %arg3: memref<16x32xf32, #tpu.memory_space<vmem>>, %arg4: memref<16x32xf32, #tpu.memory_space<vmem>>, %arg5: memref<32x64xf32, #tpu.memory_space<vmem>>, %arg6: memref<1x64xf32, #tpu.memory_space<vmem>>, %arg7: memref<64x32xf32, #tpu.memory_space<vmem>>, %arg8: memref<1x32xf32, #tpu.memory_space<vmem>>, %arg9: memref<32x64xf32, #tpu.memory_space<vmem>>, %arg10: memref<1x64xf32, #tpu.memory_space<vmem>>, %arg11: memref<64x32xf32, #tpu.memory_space<vmem>>, %arg12: memref<1x32xf32, #tpu.memory_space<vmem>>, %arg13: memref<16x32xf32, #tpu.memory_space<vmem>>, %arg14: memref<16x32xf32, #tpu.memory_space<vmem>>, %arg15: memref<16x32xf32, #tpu.memory_space<vmem>>, %arg16: memref<16x32xf32, #tpu.memory_space<vmem>>) attributes {dimension_semantics = [#tpu.dimension_semantics<parallel>], iteration_bounds = array<i64: 1>, scalar_prefetch = 0 : i64, scratch_operands = 0 : i64, tpu.core_type = #tpu.core_type<tc>, window_params = [{transform_indices = @transform_0, window_bounds = array<i64: 16, 32>}, {transform_indices = @transform_1, window_bounds = array<i64: 16, 32>}, {transform_indices = @transform_2, window_bounds = array<i64: 16, 32>}, {transform_indices = @transform_3, window_bounds = array<i64: 16, 32>}, {pipeline_mode = #tpu.pipeline_mode<synchronous>, transform_indices = @transform_4, window_bounds = array<i64: 32, 64>}, {pipeline_mode = #tpu.pipeline_mode<synchronous>, transform_indices = @transform_5, window_bounds = array<i64: 1, 64>}, {pipeline_mode = #tpu.pipeline_mode<synchronous>, transform_indices = @transform_6, window_bounds = array<i64: 64, 32>}, {pipeline_mode = #tpu.pipeline_mode<synchronous>, transform_indices = @transform_7, window_bounds = array<i64: 1, 32>}, {pipeline_mode = #tpu.pipeline_mode<synchronous>, transform_indices = @transform_8, window_bounds = array<i64: 32, 64>}, {pipeline_mode = #tpu.pipeline_mode<synchronous>, transform_indices = @transform_9, window_bounds = array<i64: 1, 64>}, {pipeline_mode = #tpu.pipeline_mode<synchronous>, transform_indices = @transform_10, window_bounds = array<i64: 64, 32>}, {pipeline_mode = #tpu.pipeline_mode<synchronous>, transform_indices = @transform_11, window_bounds = array<i64: 1, 32>}, {transform_indices = @transform_12, window_bounds = array<i64: 16, 32>}, {transform_indices = @transform_13, window_bounds = array<i64: 16, 32>}, {transform_indices = @transform_14, window_bounds = array<i64: 16, 32>}, {transform_indices = @transform_15, window_bounds = array<i64: 16, 32>}]} {
    %c0 = arith.constant 0 : index
    %c0_0 = arith.constant 0 : index
    %0 = vector.load %arg1[%c0, %c0_0] : memref<16x32xf32, #tpu.memory_space<vmem>>, vector<16x32xf32>
    %c0_1 = arith.constant 0 : index
    %c0_2 = arith.constant 0 : index
    %1 = vector.load %arg2[%c0_1, %c0_2] : memref<16x32xf32, #tpu.memory_space<vmem>>, vector<16x32xf32>
    %c0_3 = arith.constant 0 : index
    %c0_4 = arith.constant 0 : index
    %2 = vector.load %arg3[%c0_3, %c0_4] : memref<16x32xf32, #tpu.memory_space<vmem>>, vector<16x32xf32>
    %c0_5 = arith.constant 0 : index
    %c0_6 = arith.constant 0 : index
    %3 = vector.load %arg4[%c0_5, %c0_6] : memref<16x32xf32, #tpu.memory_space<vmem>>, vector<16x32xf32>
    %c0_7 = arith.constant 0 : index
    %c0_8 = arith.constant 0 : index
    %4 = vector.load %arg5[%c0_7, %c0_8] : memref<32x64xf32, #tpu.memory_space<vmem>>, vector<32x64xf32>
    %cst = arith.constant dense<0.000000e+00> : vector<16x64xf32>
    %5 = tpu.matmul %1, %4, %cst {dimension_numbers = #tpu.dot_dimension_numbers<[1], [0], [0], [1], [0, 0, 1, 1], [], []>} : vector<16x32xf32>, vector<32x64xf32>, vector<16x64xf32> -> vector<16x64xf32>
    %c0_9 = arith.constant 0 : index
    %c0_10 = arith.constant 0 : index
    %6 = vector.load %arg6[%c0_9, %c0_10] : memref<1x64xf32, #tpu.memory_space<vmem>>, vector<1x64xf32>
    %7 = vector.broadcast %6 : vector<1x64xf32> to vector<16x64xf32>
    %8 = arith.addf %5, %7 : vector<16x64xf32>
    %9 = math.tanh %8 : vector<16x64xf32>
    %c0_11 = arith.constant 0 : index
    %c0_12 = arith.constant 0 : index
    %10 = vector.load %arg7[%c0_11, %c0_12] : memref<64x32xf32, #tpu.memory_space<vmem>>, vector<64x32xf32>
    %cst_13 = arith.constant dense<0.000000e+00> : vector<16x32xf32>
    %11 = tpu.matmul %9, %10, %cst_13 {dimension_numbers = #tpu.dot_dimension_numbers<[1], [0], [0], [1], [0, 0, 1, 1], [], []>} : vector<16x64xf32>, vector<64x32xf32>, vector<16x32xf32> -> vector<16x32xf32>
    %c0_14 = arith.constant 0 : index
    %c0_15 = arith.constant 0 : index
    %12 = vector.load %arg8[%c0_14, %c0_15] : memref<1x32xf32, #tpu.memory_space<vmem>>, vector<1x32xf32>
    %13 = vector.broadcast %12 : vector<1x32xf32> to vector<16x32xf32>
    %14 = arith.addf %11, %13 : vector<16x32xf32>
    %cst_16 = arith.constant 1.000000e-01 : f32
    %15 = vector.broadcast %cst_16 : f32 to vector<16x32xf32>
    %16 = arith.mulf %14, %15 : vector<16x32xf32>
    %17 = arith.addf %2, %16 : vector<16x32xf32>
    %cst_17 = arith.constant 1.000000e-01 : f32
    %18 = vector.broadcast %cst_17 : f32 to vector<16x32xf32>
    %19 = arith.mulf %17, %18 : vector<16x32xf32>
    %20 = arith.addf %0, %19 : vector<16x32xf32>
    %c0_18 = arith.constant 0 : index
    %c0_19 = arith.constant 0 : index
    %21 = vector.load %arg9[%c0_18, %c0_19] : memref<32x64xf32, #tpu.memory_space<vmem>>, vector<32x64xf32>
    %cst_20 = arith.constant dense<0.000000e+00> : vector<16x64xf32>
    %22 = tpu.matmul %20, %21, %cst_20 {dimension_numbers = #tpu.dot_dimension_numbers<[1], [0], [0], [1], [0, 0, 1, 1], [], []>} : vector<16x32xf32>, vector<32x64xf32>, vector<16x64xf32> -> vector<16x64xf32>
    %c0_21 = arith.constant 0 : index
    %c0_22 = arith.constant 0 : index
    %23 = vector.load %arg10[%c0_21, %c0_22] : memref<1x64xf32, #tpu.memory_space<vmem>>, vector<1x64xf32>
    %24 = vector.broadcast %23 : vector<1x64xf32> to vector<16x64xf32>
    %25 = arith.addf %22, %24 : vector<16x64xf32>
    %26 = math.tanh %25 : vector<16x64xf32>
    %c0_23 = arith.constant 0 : index
    %c0_24 = arith.constant 0 : index
    %27 = vector.load %arg11[%c0_23, %c0_24] : memref<64x32xf32, #tpu.memory_space<vmem>>, vector<64x32xf32>
    %cst_25 = arith.constant dense<0.000000e+00> : vector<16x32xf32>
    %28 = tpu.matmul %26, %27, %cst_25 {dimension_numbers = #tpu.dot_dimension_numbers<[1], [0], [0], [1], [0, 0, 1, 1], [], []>} : vector<16x64xf32>, vector<64x32xf32>, vector<16x32xf32> -> vector<16x32xf32>
    %c0_26 = arith.constant 0 : index
    %c0_27 = arith.constant 0 : index
    %29 = vector.load %arg12[%c0_26, %c0_27] : memref<1x32xf32, #tpu.memory_space<vmem>>, vector<1x32xf32>
    %30 = vector.broadcast %29 : vector<1x32xf32> to vector<16x32xf32>
    %31 = arith.addf %28, %30 : vector<16x32xf32>
    %cst_28 = arith.constant 1.000000e-01 : f32
    %32 = vector.broadcast %cst_28 : f32 to vector<16x32xf32>
    %33 = arith.mulf %31, %32 : vector<16x32xf32>
    %34 = arith.addf %3, %33 : vector<16x32xf32>
    %cst_29 = arith.constant 1.000000e-01 : f32
    %35 = vector.broadcast %cst_29 : f32 to vector<16x32xf32>
    %36 = arith.mulf %34, %35 : vector<16x32xf32>
    %37 = arith.addf %1, %36 : vector<16x32xf32>
    %c0_30 = arith.constant 0 : index
    %c0_31 = arith.constant 0 : index
    %38 = vector.load %arg13[%c0_30, %c0_31] : memref<16x32xf32, #tpu.memory_space<vmem>>, vector<16x32xf32>
    tpu.vector_store %arg13[%c0_30, %c0_31], %20 {strides = array<i32>} : memref<16x32xf32, #tpu.memory_space<vmem>>, vector<16x32xf32>,
    %c0_32 = arith.constant 0 : index
    %c0_33 = arith.constant 0 : index
    %39 = vector.load %arg14[%c0_32, %c0_33] : memref<16x32xf32, #tpu.memory_space<vmem>>, vector<16x32xf32>
    tpu.vector_store %arg14[%c0_32, %c0_33], %37 {strides = array<i32>} : memref<16x32xf32, #tpu.memory_space<vmem>>, vector<16x32xf32>,
    %c0_34 = arith.constant 0 : index
    %c0_35 = arith.constant 0 : index
    %40 = vector.load %arg15[%c0_34, %c0_35] : memref<16x32xf32, #tpu.memory_space<vmem>>, vector<16x32xf32>
    tpu.vector_store %arg15[%c0_34, %c0_35], %17 {strides = array<i32>} : memref<16x32xf32, #tpu.memory_space<vmem>>, vector<16x32xf32>,
    %c0_36 = arith.constant 0 : index
    %c0_37 = arith.constant 0 : index
    %41 = vector.load %arg16[%c0_36, %c0_37] : memref<16x32xf32, #tpu.memory_space<vmem>>, vector<16x32xf32>
    tpu.vector_store %arg16[%c0_36, %c0_37], %34 {strides = array<i32>} : memref<16x32xf32, #tpu.memory_space<vmem>>, vector<16x32xf32>,
    return
  }
  func.func @transform_0(%arg0: i32) -> (i32, i32) {
    %c0_i32 = arith.constant 0 : i32
    %c0_i32_0 = arith.constant 0 : i32
    return %arg0, %c0_i32 : i32, i32
  }
  func.func @transform_1(%arg0: i32) -> (i32, i32) {
    %c0_i32 = arith.constant 0 : i32
    %c0_i32_0 = arith.constant 0 : i32
    return %arg0, %c0_i32 : i32, i32
  }
  func.func @transform_2(%arg0: i32) -> (i32, i32) {
    %c0_i32 = arith.constant 0 : i32
    %c0_i32_0 = arith.constant 0 : i32
    return %arg0, %c0_i32 : i32, i32
  }
  func.func @transform_3(%arg0: i32) -> (i32, i32) {
    %c0_i32 = arith.constant 0 : i32
    %c0_i32_0 = arith.constant 0 : i32
    return %arg0, %c0_i32 : i32, i32
  }
  func.func @transform_4(%arg0: i32) -> (i32, i32) {
    %c0_i32 = arith.constant 0 : i32
    %c0_i32_0 = arith.constant 0 : i32
    %c0_i32_1 = arith.constant 0 : i32
    return %c0_i32, %c0_i32_0 : i32, i32
  }
  func.func @transform_5(%arg0: i32) -> (i32, i32) {
    %c0_i32 = arith.constant 0 : i32
    %c0_i32_0 = arith.constant 0 : i32
    %c0_i32_1 = arith.constant 0 : i32
    return %c0_i32, %c0_i32_0 : i32, i32
  }
  func.func @transform_6(%arg0: i32) -> (i32, i32) {
    %c0_i32 = arith.constant 0 : i32
    %c0_i32_0 = arith.constant 0 : i32
    %c0_i32_1 = arith.constant 0 : i32
    return %c0_i32, %c0_i32_0 : i32, i32
  }
  func.func @transform_7(%arg0: i32) -> (i32, i32) {
    %c0_i32 = arith.constant 0 : i32
    %c0_i32_0 = arith.constant 0 : i32
    %c0_i32_1 = arith.constant 0 : i32
    return %c0_i32, %c0_i32_0 : i32, i32
  }
  func.func @transform_8(%arg0: i32) -> (i32, i32) {
    %c0_i32 = arith.constant 0 : i32
    %c0_i32_0 = arith.constant 0 : i32
    %c0_i32_1 = arith.constant 0 : i32
    return %c0_i32, %c0_i32_0 : i32, i32
  }
  func.func @transform_9(%arg0: i32) -> (i32, i32) {
    %c0_i32 = arith.constant 0 : i32
    %c0_i32_0 = arith.constant 0 : i32
    %c0_i32_1 = arith.constant 0 : i32
    return %c0_i32, %c0_i32_0 : i32, i32
  }
  func.func @transform_10(%arg0: i32) -> (i32, i32) {
    %c0_i32 = arith.constant 0 : i32
    %c0_i32_0 = arith.constant 0 : i32
    %c0_i32_1 = arith.constant 0 : i32
    return %c0_i32, %c0_i32_0 : i32, i32
  }
  func.func @transform_11(%arg0: i32) -> (i32, i32) {
    %c0_i32 = arith.constant 0 : i32
    %c0_i32_0 = arith.constant 0 : i32
    %c0_i32_1 = arith.constant 0 : i32
    return %c0_i32, %c0_i32_0 : i32, i32
  }
  func.func @transform_12(%arg0: i32) -> (i32, i32) {
    %c0_i32 = arith.constant 0 : i32
    %c0_i32_0 = arith.constant 0 : i32
    return %arg0, %c0_i32 : i32, i32
  }
  func.func @transform_13(%arg0: i32) -> (i32, i32) {
    %c0_i32 = arith.constant 0 : i32
    %c0_i32_0 = arith.constant 0 : i32
    return %arg0, %c0_i32 : i32, i32
  }
  func.func @transform_14(%arg0: i32) -> (i32, i32) {
    %c0_i32 = arith.constant 0 : i32
    %c0_i32_0 = arith.constant 0 : i32
    return %arg0, %c0_i32 : i32, i32
  }
  func.func @transform_15(%arg0: i32) -> (i32, i32) {
    %c0_i32 = arith.constant 0 : i32
    %c0_i32_0 = arith.constant 0 : i32
    return %arg0, %c0_i32 : i32, i32
  }
}

</mosaic_0001>

<bundles_post_ra>
// kernel: reversible_lnn_block.1
= control target key start
LH: loop header
LB: loop body
LE: loop exit
PB: predicated region body
PF: predicated region fallthrough
CT: control target
= control target key end

     0   :  { %21 = vsyncpa [#allocation3], 0  ;;  %s1070_s0 = inlined_call_operand.vmem [shape: f32[16,32], index: 0, kind: input, shape index: {}]   ;;  %s1071_s1 = inlined_call_operand.vmem [shape: f32[16,32], index: 1, kind: input, shape index: {}]   ;;  %s1072_s2 = inlined_call_operand.vmem [shape: f32[16,32], index: 2, kind: input, shape index: {}]   ;;  %s1073_s3 = inlined_call_operand.vmem [shape: f32[16,32], index: 3, kind: input, shape index: {}]   ;;  %s1074_s4 = inlined_call_operand.vmem [shape: f32[32,64], index: 4, kind: input, shape index: {}]   ;;  %s1075_s5 = inlined_call_operand.vmem [shape: f32[1,64], index: 5, kind: input, shape index: {}]   ;;  %s1076_s6 = inlined_call_operand.vmem [shape: f32[64,32], index: 6, kind: input, shape index: {}]   ;;  %s1077_s7 = inlined_call_operand.vmem [shape: f32[1,32], index: 7, kind: input, shape index: {}]   ;;  %s1078_s8 = inlined_call_operand.vmem [shape: f32[32,64], index: 8, kind: input, shape index: {}]   ;;  %s1079_s9 = inlined_call_operand.vmem [shape: f32[1,64], index: 9, kind: input, shape index: {}]   ;;  %s1080_s10 = inlined_call_operand.vmem [shape: f32[64,32], index: 10, kind: input, shape index: {}]   ;;  %s1081_s11 = inlined_call_operand.vmem [shape: f32[1,32], index: 11, kind: input, shape index: {}]   ;;  %s1082_s12 = inlined_call_operand.hbm [shape: f32[16,32], index: 12, kind: output, shape index: {0}]   ;;  %s1083_s13 = inlined_call_operand.hbm [shape: f32[16,32], index: 13, kind: output, shape index: {1}]   ;;  %s1084_s14 = inlined_call_operand.hbm [shape: f32[16,32], index: 14, kind: output, shape index: {2}]   ;;  %s1085_s15 = inlined_call_operand.hbm [shape: f32[16,32], index: 15, kind: output, shape index: {3}]  }
   0x1   :  { %22 = vsyncpa [#allocation5], 0  ;;  %v56_v0 = vld [vmem:[%s1074_s4] sm:$0xff]  ;;  %v57_v1 = vld [vmem:[%s1074_s4 + $0x8] sm:$0xff]  ;;  %vm67_vm0 = vcmask 261120  }
   0x2   :  { %v58_v2 = vld [vmem:[%s1074_s4 + $0x10] sm:$0xff]  ;;  %v629_v3 = vpack.c.bf16 %v57_v1, %v56_v0  ;;  %v59_v4 = vld [vmem:[%s1074_s4 + $0x18] sm:$0xff]  ;;  %v886_v5 = vld [vmem:[%s1071_s1] sm:$0xff] }
   0x3   :  { %v633_v6 = vpack.c.bf16 %v59_v4, %v58_v2  ;;  %577 = vmatprep.mubr.msk.f32.mxu1 %vm67_vm0, %v886_v5 }
   0x4   :  { %23 = vsyncpa [#allocation8], 0  ;;  %630 = vmatprep.subr.bf16.mxu1 %v629_v3  ;;  %v893_v7 = vld [vmem:[%s1071_s1 + $0x8] sm:$0xff]  ;;  %v151_v8 = vld [vmem:[%s1076_s6] sm:$0xff]  ;;  %vm166_vm1 = vcmask 523264  }
   0x5   :  { %632 = vmatpush3.bf16.msra.mxu1 %v629_v3  ;;  %v152_v9 = vld [vmem:[%s1076_s6 + $0x8] sm:$0xff]  ;;  %v153_v11 = vld [vmem:[%s1076_s6 + $0x10] sm:$0xff]  ;;  %v154_v12 = vld [vmem:[%s1076_s6 + $0x18] sm:$0xff] }
   0x6   :  { %634 = vmatprep.subr.bf16.mxu1 %v633_v6  ;;  %v637_v10 = vpack.c.bf16 %v152_v9, %v151_v8  ;;  %v641_v13 = vpack.c.bf16 %v154_v12, %v153_v11  ;;  %v155_v14 = vld [vmem:[%s1076_s6 + $0x20] sm:$0xff]  ;;  %v156_v15 = vld [vmem:[%s1076_s6 + $0x28] sm:$0xff]  ;;  %v157_v16 = vld [vmem:[%s1076_s6 + $0x30] sm:$0xff] }
   0x7   :  { %v645_v17 = vpack.c.bf16 %v156_v15, %v155_v14  ;;  %v158_v18 = vld [vmem:[%s1076_s6 + $0x38] sm:$0xff]  ;;  %v525_v20 = vld [vmem:[%s1075_s5] ss:$0 sm:$0xff]  ;;  %v257_v28 = vld [vmem:[%s1078_s8 + $0x8] sm:$0xff] }
   0x8   :  { %v649_v19 = vpack.c.bf16 %v158_v18, %v157_v16  ;;  %v256_v27 = vld [vmem:[%s1078_s8] sm:$0xff]  ;;  %v258_v30 = vld [vmem:[%s1078_s8 + $0x10] sm:$0xff]  ;;  %v259_v31 = vld [vmem:[%s1078_s8 + $0x18] sm:$0xff] }
   0x9   :  { %636 = vmatpush3.bf16.msra.mxu1 %v633_v6  ;;  %v653_v29 = vpack.c.bf16 %v257_v28, %v256_v27  ;;  %v657_v32 = vpack.c.bf16 %v259_v31, %v258_v30  ;;  %v528_v33 = vld [vmem:[%s1077_s7] ss:$0 sm:$0xff]  ;;  %v53_v37 = vld [vmem:[%s1072_s2 + $0x8] sm:$0xff]  ;;  %v352_v53 = vld [vmem:[%s1080_s10 + $0x10] sm:$0xff] }
   0xa   :  { %638 = vmatprep.subr.bf16.mxu1 %v637_v10  ;;  %v52_v40 = vld [vmem:[%s1072_s2] sm:$0xff]  ;;  %v49_v43 = vld [vmem:[%s1070_s0 + $0x8] sm:$0xff]  ;;  %v353_v54 = vld [vmem:[%s1080_s10 + $0x18] sm:$0xff] }
   0xb   :  { %654 = vmatprep.subr.bf16.mxu0 %v653_v29  ;;  %v48_v46 = vld [vmem:[%s1070_s0] sm:$0xff]  ;;  %v351_v51 = vld [vmem:[%s1080_s10 + $0x8] sm:$0xff]  ;;  %v665_v55 = vpack.c.bf16 %v353_v54, %v352_v53  ;;  %v356_v58 = vld [vmem:[%s1080_s10 + $0x30] sm:$0xff] }
   0xc   :  { %578 = vmatmul.mubr.msk.f32.vlgmr.msra.gmra.mrb[0].mxu1 %vm67_vm0, %v893_v7  ;;  %656 = vmatpush3.bf16.msra.mxu0 %v653_v29  ;;  %v350_v50 = vld [vmem:[%s1080_s10] sm:$0xff]  ;;  %v355_v57 = vld [vmem:[%s1080_s10 + $0x28] sm:$0xff]  ;;  %v357_v60 = vld [vmem:[%s1080_s10 + $0x38] sm:$0xff] }
   0xd   :  { %640 = vmatpush3.bf16.msra.mxu1 %v637_v10  ;;  %658 = vmatprep.subr.bf16.mxu0 %v657_v32  ;;  %v661_v52 = vpack.c.bf16 %v351_v51, %v350_v50  ;;  %v354_v56 = vld [vmem:[%s1080_s10 + $0x20] sm:$0xff]  ;;  %v673_v61 = vpack.c.bf16 %v357_v60, %v356_v58  ;;  %s785_s10 = smov [#allocation2]  }
   0xe   :  { %642 = vmatprep.subr.bf16.mxu1 %v641_v13  ;;  %v669_v59 = vpack.c.bf16 %v355_v57, %v354_v56  ;;  %v531_v62 = vld [vmem:[%s1079_s9] ss:$0 sm:$0xff]  ;;  %s467_s25 = sshll.u32 %s785_s10, 4  ;;  %s468_s25 = int_to_ptr.vmem [resolvable:$true] %s467_s25 }
   0xf   :  { %s691_s8 = scalar_lea.vmem %s468_s25, 256  ;;  %p696_p1 = scmp.lt.s32.totalorder %s468_s25, %s468_s25 }
  0x10   :  { %660 = vmatpush3.bf16.msra.mxu0 %v657_v32  ;;  %p692_p0 = scmp.ne.s32.totalorder %s468_s25, %s691_s8  ;;  %p697_p2 = scmp.lt.s32.totalorder %s691_s8, %s691_s8 }
  0x11   :  { %644 = vmatpush3.bf16.msra.mxu1 %v641_v13  ;;  %662 = vmatprep.subr.bf16.mxu0 %v661_v52 }
  0x12   :  { %646 = vmatprep.subr.bf16.mxu1 %v645_v17  ;;  %p698_p3 = por %p697_p2, %p696_p1 }
  0x14   :  { %p699_p4 = pnand %p698_p3, %p692_p0 }
  0x15   :  { %648 = vmatpush3.bf16.msra.mxu1 %v645_v17 }
  0x16   :  { %650 = vmatprep.subr.bf16.mxu1 %v649_v19 }
  0x19   :  { %652 = vmatpush3.bf16.msra.mxu1 %v649_v19 }
  0xdf   :  { %v579_v21 = vpop.f32.mrb[0].mxu1 }
  0xe0   :  { %v146_v22 = vadd.f32 %v579_v21, %v525_v20  ;;  %v140_v23 = vpop.f32.mrb[1].mxu1 }
  0xe1   :  { %v141_v24 = vadd.f32 %v525_v20, %v140_v23 }
  0xe3   :  { %683 = vtanh.f32 %v141_v24 }
  0xe4   :  { %685 = vtanh.f32 %v146_v22 }
  0xed   :  { %v684_v25 = vpop.eup %683 }
  0xee   :  { %v686_v26 = vpop.eup %685  ;;  %596 = vmatprep.mubr.msk.f32.mxu1 %vm166_vm1, %v684_v25 }
  0xef   :  { %597 = vmatmul.mubr.msk.f32.vlgmr.msra.gmra.mrb[2].mxu1 %vm166_vm1, %v686_v26 }
 0x1c2   :  { %v598_v34 = vpop.f32.mrb[2].mxu1 }
 0x1c3   :  { %v245_v35 = vadd.f32 %v598_v34, %v528_v33  ;;  %v239_v36 = vpop.f32.mrb[3].mxu1 }
 0x1c4   :  { %v240_v38 = vadd.f32 %v528_v33, %v239_v36 }
 0x1c5   :  { %v249_v39 = vmul.f32 0.1, %v245_v35 }
 0x1c6   :  { %v248_v41 = vmul.f32 0.1, %v240_v38 }
 0x1c7   :  { %v251_v42 = vadd.f32 %v249_v39, %v53_v37 }
 0x1c8   :  { %v250_v44 = vadd.f32 %v248_v41, %v52_v40 }
 0x1c9   :  { %v253_v45 = vmul.f32 0.1, %v251_v42  ;;  %459 = vst.msk [vmem:[#allocation6 + $0x8] sm:$0xff] %vm67_vm0, %v251_v42 }
 0x1ca   :  { %458 = vst.msk [vmem:[#allocation6] sm:$0xff] %vm67_vm0, %v250_v44  ;;  %v252_v47 = vmul.f32 0.1, %v250_v44 }
 0x1cb   :  { %v255_v48 = vadd.f32 %v253_v45, %v49_v43 }
 0x1cc   :  { %v254_v49 = vadd.f32 %v252_v47, %v48_v46 }
 0x1cd   :  { %455 = vst.msk [vmem:[#allocation2 + $0x8] sm:$0xff] %vm67_vm0, %v255_v48 }
 0x1ce   :  { %607 = vmatprep.mubr.msk.f32.mxu0 %vm67_vm0, %v254_v49  ;;  %454 = vst.msk [vmem:[#allocation2] sm:$0xff] %vm67_vm0, %v254_v49 }
 0x1cf   :  { %608 = vmatmul.mubr.msk.f32.vlgmr.msra.gmra.mrb[0].mxu0 %vm67_vm0, %v255_v48 }
 0x1d0   :  { %664 = vmatpush3.bf16.msra.mxu0 %v661_v52 }
 0x1d1   :  { %666 = vmatprep.subr.bf16.mxu0 %v665_v55 }
 0x1d4   :  { %668 = vmatpush3.bf16.msra.mxu0 %v665_v55 }
 0x1d5   :  { %670 = vmatprep.subr.bf16.mxu0 %v669_v59 }
 0x1d8   :  { %672 = vmatpush3.bf16.msra.mxu0 %v669_v59 }
 0x1d9   :  { %674 = vmatprep.subr.bf16.mxu0 %v673_v61 }
 0x1dc   :  { %676 = vmatpush3.bf16.msra.mxu0 %v673_v61 }
 0x2a2   :  { %v609_v63 = vpop.f32.mrb[0].mxu0 }
 0x2a3   :  { %v345_v0 = vadd.f32 %v609_v63, %v531_v62  ;;  %v339_v1 = vpop.f32.mrb[1].mxu0 }
 0x2a4   :  { %v340_v2 = vadd.f32 %v531_v62, %v339_v1 }
 0x2a6   :  { %687 = vtanh.f32 %v340_v2 }
 0x2a7   :  { %689 = vtanh.f32 %v345_v0 }
 0x2b0   :  { %v688_v3 = vpop.eup %687 }
 0x2b1   :  { %v690_v4 = vpop.eup %689  ;;  %626 = vmatprep.mubr.msk.f32.mxu0 %vm166_vm1, %v688_v3 }
 0x2b2   :  { %627 = vmatmul.mubr.msk.f32.vlgmr.msra.gmra.mrb[2].mxu0 %vm166_vm1, %v690_v4 }
 0x2b3   :  { %702 = shalt.err (!%p699_p4)
}
 0x2b4   :  { %s703_s7 = scalar_lea.hbm %s1082_s12, 256 }
 0x2b5   :  { %p704_p5 = scmp.ne.s32.totalorder %s1082_s12, %s703_s7  ;;  %p707_p6 = scmp.lt.u32.totalorder %s703_s7, %s1082_s12 }
 0x2b7   :  { %p709_p7 = pnand %p707_p6, %p704_p5 }
 0x2b9   :  { %712 = shalt.err (!%p709_p7)
}
 0x2ba   :  { %s786_s4 = smov 128   ;;  %s787_s0 = smov 8   ;;  %v534_v6 = vld [vmem:[%s1081_s11] ss:$0 sm:$0xff]  ;;  %v55_v11 = vld [vmem:[%s1073_s3 + $0x8] sm:$0xff] }
 0x2bb   :  { %473 = dma.vmem_to_hbm [thread:$0]  %s468_s25, 256, %s1082_s12, [#allocation3], %s786_s4, %s786_s4, %s787_s0  }
 0x2bc   :  { %v54_v14 = vld [vmem:[%s1073_s3] sm:$0xff]  ;;  %s788_s20 = smov [#allocation7]   ;;  %s789_s11 = smov [#allocation4]  }
 0x2bd   :  { %s503_s21 = sshll.u32 %s788_s20, 4  ;;  %s479_s12 = sshll.u32 %s789_s11, 4  ;;  %s504_s21 = int_to_ptr.vmem [resolvable:$true] %s503_s21  ;;  %s480_s12 = int_to_ptr.vmem [resolvable:$true] %s479_s12 }
 0x2be   :  { %s790_s22 = smov [#allocation6]   ;;  %s713_s24 = scalar_lea.vmem %s504_s21, 256 }
 0x2bf   :  { %s491_s23 = sshll.u32 %s790_s22, 4  ;;  %p714_p8 = scmp.ne.s32.totalorder %s504_s21, %s713_s24  ;;  %s1032_s23 = int_to_ptr.vmem [resolvable:$true] %s491_s23 }
 0x2c0   :  { %p718_p9 = scmp.lt.s32.totalorder %s504_s21, %s504_s21  ;;  %p719_p10 = scmp.lt.s32.totalorder %s713_s24, %s713_s24 }
 0x2c2   :  { %p720_p11 = por %p719_p10, %p718_p9 }
 0x2c4   :  { %p721_p12 = pnand %p720_p11, %p714_p8 }
 0x385   :  { %v628_v8 = vpop.f32.mrb[2].mxu0 }
 0x386   :  { %v443_v9 = vadd.f32 %v628_v8, %v534_v6  ;;  %v437_v10 = vpop.f32.mrb[3].mxu0 }
 0x387   :  { %v438_v12 = vadd.f32 %v534_v6, %v437_v10 }
 0x388   :  { %v447_v13 = vmul.f32 0.1, %v443_v9 }
 0x389   :  { %v446_v15 = vmul.f32 0.1, %v438_v12 }
 0x38a   :  { %v449_v16 = vadd.f32 %v447_v13, %v55_v11 }
 0x38b   :  { %v448_v17 = vadd.f32 %v446_v15, %v54_v14 }
 0x38c   :  { %v451_v18 = vmul.f32 0.1, %v449_v16  ;;  %461 = vst.msk [vmem:[#allocation7 + $0x8] sm:$0xff] %vm67_vm0, %v449_v16 }
 0x38d   :  { %v450_v19 = vmul.f32 0.1, %v448_v17  ;;  %460 = vst.msk [vmem:[#allocation7] sm:$0xff] %vm67_vm0, %v448_v17 }
 0x38e   :  { %v453_v20 = vadd.f32 %v451_v18, %v893_v7 }
 0x38f   :  { %724 = shalt.err (!%p721_p12)
}
 0x390   :  { %s725_s25 = scalar_lea.hbm %s1085_s15, 256 }
 0x391   :  { %p726_p13 = scmp.ne.s32.totalorder %s1085_s15, %s725_s25  ;;  %p729_p0 = scmp.lt.u32.totalorder %s725_s25, %s1085_s15 }
 0x393   :  { %p731_p1 = pnand %p729_p0, %p726_p13 }
 0x395   :  { %734 = shalt.err (!%p731_p1)
}
 0x396   :  { %509 = dma.vmem_to_hbm [thread:$0]  %s504_s21, 256, %s1085_s15, [#allocation8], %s786_s4, %s786_s4, %s787_s0   ;;  %v452_v7 = vadd.f32 %v450_v19, %v886_v5  ;;  %457 = vst.msk [vmem:[#allocation4 + $0x8] sm:$0xff] %vm67_vm0, %v453_v20 }
 0x397   :  { %s735_s28 = scalar_lea.vmem %s480_s12, 256  ;;  %p740_p3 = scmp.lt.s32.totalorder %s480_s12, %s480_s12 }
 0x398   :  { %456 = vst.msk [vmem:[#allocation4] sm:$0xff] %vm67_vm0, %v452_v7  ;;  %p736_p2 = scmp.ne.s32.totalorder %s480_s12, %s735_s28  ;;  %p741_p4 = scmp.lt.s32.totalorder %s735_s28, %s735_s28 }
 0x39a   :  { %p742_p5 = por %p741_p4, %p740_p3 }
 0x39c   :  { %p743_p6 = pnand %p742_p5, %p736_p2 }
 0x39e   :  { %746 = shalt.err (!%p743_p6)
}
 0x39f   :  { %s747_s15 = scalar_lea.hbm %s1083_s13, 256 }
 0x3a0   :  { %p748_p7 = scmp.ne.s32.totalorder %s1083_s13, %s747_s15  ;;  %p751_p8 = scmp.lt.u32.totalorder %s747_s15, %s1083_s13 }
 0x3a2   :  { %p753_p9 = pnand %p751_p8, %p748_p7 }
 0x3a4   :  { %756 = shalt.err (!%p753_p9)
}
 0x3a5   :  { %485 = dma.vmem_to_hbm [thread:$0]  %s480_s12, 256, %s1083_s13, [#allocation5], %s786_s4, %s786_s4, %s787_s0  }
 0x3a6   :  { %s757_s1 = scalar_lea.vmem %s1032_s23, 256  ;;  %p762_p11 = scmp.lt.s32.totalorder %s1032_s23, %s1032_s23 }
 0x3a7   :  { %p758_p10 = scmp.ne.s32.totalorder %s1032_s23, %s757_s1  ;;  %p763_p12 = scmp.lt.s32.totalorder %s757_s1, %s757_s1 }
 0x3a9   :  { %p764_p13 = por %p763_p12, %p762_p11 }
 0x3ab   :  { %p765_p0 = pnand %p764_p13, %p758_p10 }
 0x3ad   :  { %768 = shalt.err (!%p765_p0)
}
 0x3ae   :  { %s769_s11 = scalar_lea.hbm %s1084_s14, 256 }
 0x3af   :  { %p770_p1 = scmp.ne.s32.totalorder %s1084_s14, %s769_s11  ;;  %p773_p2 = scmp.lt.u32.totalorder %s769_s11, %s1084_s14 }
 0x3b1   :  { %p775_p3 = pnand %p773_p2, %p770_p1 }
 0x3b3   :  { %778 = shalt.err (!%p775_p3)
}
 0x3b4   :  { %497 = dma.vmem_to_hbm [thread:$0]  %s1032_s23, 256, %s1084_s14, [#allocation5], %s786_s4, %s786_s4, %s787_s0  }
 0x3b5   :  { %779 = dma.done.wait [#allocation3], 256  }
 0x3b6   :  { %780 = vsyncadd [#allocation3], 4294967040 }
 0x3b7   :  { %781 = dma.done.wait [#allocation5], 512  }
 0x3b8   :  { %782 = vsyncadd [#allocation5], 4294966784 }
 0x3b9   :  { %783 = dma.done.wait [#allocation8], 256  }
 0x3ba   :  { %784 = vsyncadd [#allocation8], 4294967040 }
 0x3bb   :  { %522 = vsyncpa [#allocation3], 1 }
 0x3bc   :  { %523 = vsyncpa [#allocation5], 1 }
 0x3bd   :  { %524 = vsyncpa [#allocation8], 1 }

</bundles_post_ra>
